<compile_context>
chip_gen: v7x
topology: tpu7x:2x2x1
jax: 0.10.0
libtpu: 0.0.40
codegen_flags: <defaults>
</compile_context>

<pallas_src>
import functools

import jax
import jax.numpy as jnp
from jax.experimental import pallas as pl
from jax.experimental.pallas import tpu as pltpu

K = 3          # kernel_size
STRIDE = 2     # stride
PAD = 1        # padding
OUT_PAD = 1    # output_padding
EPS = 1e-5     # InstanceNorm2d default eps


def _round_up(v, m):
    return ((v + m - 1) // m) * m


def _expanding_block_kernel(x_ref, w_ref, b_ref, o_ref, *, h, w, use_bn):
    # x_ref: (1, c_in_p, h*w)        lane-dense input                  (VMEM)
    # w_ref: (9, c_out_tile, c_in_p) tap-major ConvTranspose weights   (VMEM)
    # b_ref: (c_out_tile, 1)         bias                              (VMEM)
    # o_ref: (1, 4, c_out_tile, h*w) parity-major output, p = a*2 + b  (VMEM)
    hw = h * w
    x = x_ref[0]                                          # (c_in_p, hw)

    # Shifted views via lane rolls (XLU) + boundary masks (no padded width).
    lane = jax.lax.broadcasted_iota(jnp.int32, x.shape, 1)
    col_ok = (lane % w) != (w - 1)          # p+1 in range
    row_ok = lane < (h - 1) * w             # m+1 in range
    s00 = x                                                              # x[m,   p  ]
    s01 = jnp.where(col_ok, pltpu.roll(x, hw - 1, 1), 0.0)               # x[m,   p+1]
    s10 = jnp.where(row_ok, pltpu.roll(x, hw - w, 1), 0.0)               # x[m+1, p  ]
    s11 = jnp.where(col_ok & row_ok, pltpu.roll(x, hw - w - 1, 1), 0.0)  # x[m+1, p+1]

    def tap(kh, kw, s):
        # MXU: (c_out_tile, c_in_p) @ (c_in_p, hw) -> (c_out_tile, hw)
        return jnp.dot(w_ref[kh * K + kw], s,
                       preferred_element_type=jnp.float32,
                       precision=jax.lax.Precision.HIGHEST)

    # Parity (a, b) of y[2m+a, 2p+b] for ConvTranspose2d(k=3, s=2, p=1, op=1).
    y00 = tap(1, 1, s00)
    y01 = tap(1, 0, s01) + tap(1, 2, s00)
    y10 = tap(0, 1, s10) + tap(2, 1, s00)
    y11 = tap(0, 0, s11) + tap(0, 2, s10) + tap(2, 0, s01) + tap(2, 2, s00)

    if use_bn:
        # Per-channel bias is exactly cancelled by the mean subtraction -> skip.
        inv_cnt = 1.0 / (4.0 * hw)
        mean = jnp.sum(y00 + y01 + y10 + y11, axis=1, keepdims=True) * inv_cnt
        c00, c01, c10, c11 = y00 - mean, y01 - mean, y10 - mean, y11 - mean
        var = jnp.sum(c00 * c00 + c01 * c01 + c10 * c10 + c11 * c11,
                      axis=1, keepdims=True) * inv_cnt
        inv_std = jax.lax.rsqrt(var + EPS)
        o_ref[0, 0] = jnp.maximum(c00 * inv_std, 0.0)
        o_ref[0, 1] = jnp.maximum(c01 * inv_std, 0.0)
        o_ref[0, 2] = jnp.maximum(c10 * inv_std, 0.0)
        o_ref[0, 3] = jnp.maximum(c11 * inv_std, 0.0)
    else:
        b = b_ref[...]                                    # (c_out_tile, 1)
        o_ref[0, 0] = jnp.maximum(y00 + b, 0.0)
        o_ref[0, 1] = jnp.maximum(y01 + b, 0.0)
        o_ref[0, 2] = jnp.maximum(y10 + b, 0.0)
        o_ref[0, 3] = jnp.maximum(y11 + b, 0.0)


def expanding_block_forward(x_nchw, w_t, bias, *, use_bn=True):
    """x_nchw: (N, C_in, H, W); w_t: ConvTranspose2d weight (C_in, C_out, 3, 3);
    bias: (C_out,). Returns (N, C_out, 2H, 2W) float32."""
    n, c_in, h, w = x_nchw.shape
    c_out = w_t.shape[1]
    hw = h * w

    # Pad channel counts to sublane multiples (8); padded input channels are
    # zero (contribute nothing), padded output channels are sliced off below.
    c_in_p = _round_up(c_in, 8)
    c_out_p = _round_up(c_out, 8)

    # Lane-dense input (N, C_in_p, H*W), f32 transport.
    # TODO(synk): carry bf16 transport (f32 accumulation) on bandwidth-bound v5e.
    x_flat = x_nchw.astype(jnp.float32).reshape(n, c_in, hw)
    x_flat = jnp.pad(x_flat, ((0, 0), (0, c_in_p - c_in), (0, 0)))

    # Tap-major MXU-LHS weights: w_taps[kh*3+kw, co, ci] = w_t[ci, co, kh, kw].
    w_taps = jnp.transpose(w_t.astype(jnp.float32), (2, 3, 1, 0)).reshape(
        K * K, c_out, c_in)
    w_taps = jnp.pad(w_taps, ((0, 0), (0, c_out_p - c_out), (0, c_in_p - c_in)))
    b_col = jnp.pad(bias.astype(jnp.float32).reshape(c_out, 1),
                    ((0, c_out_p - c_out), (0, 0)))

    # c_out tile: split by 2 while the per-step output block exceeds ~8 MiB
    # (keeps double-buffered blocks comfortably inside v7x's 64 MiB VMEM while
    # staying a sublane-aligned divisor of c_out_p).
    cot = c_out_p
    while cot % 16 == 0 and 4 * cot * hw * 4 > (8 << 20):
        cot //= 2
    n_cout_tiles = c_out_p // cot

    kernel = functools.partial(_expanding_block_kernel, h=h, w=w, use_bn=use_bn)

    out = pl.pallas_call(
        kernel,
        out_shape=jax.ShapeDtypeStruct((n, 4, c_out_p, hw), jnp.float32),
        grid=(n, n_cout_tiles),
        in_specs=[
            pl.BlockSpec((1, c_in_p, hw), lambda i, j: (i, 0, 0)),
            pl.BlockSpec((K * K, cot, c_in_p), lambda i, j: (0, j, 0)),
            pl.BlockSpec((cot, 1), lambda i, j: (j, 0)),
        ],
        out_specs=pl.BlockSpec((1, 4, cot, hw), lambda i, j: (i, 0, j, 0)),
        compiler_params=pltpu.CompilerParams(
            dimension_semantics=("parallel", "parallel"),
            # Explicit scoped-VMEM limit; raise toward 64-100 MiB on v5e/v6e
            # for larger tiles, tile more aggressively on v7x (64 MiB/TC).
            vmem_limit_bytes=32 * 1024 * 1024,
        ),
        cost_estimate=pl.CostEstimate(
            flops=2 * 9 * n * c_in * c_out * hw,
            transcendentals=n * c_out,
            bytes_accessed=4 * (n * c_in_p * hw
                                + K * K * c_out_p * c_in_p
                                + n * 4 * c_out_p * hw),
        ),
    )(x_flat, w_taps, b_col)

    # Pixel-shuffle parity-major (n, a*2+b, co, m*w+q) -> (n, co, 2m+a, 2q+b).
    # TODO(synk): fold this interleave into the consumer (or pack column-parity
    # pairs in-kernel) to avoid the extra HBM round trip on bandwidth-bound chips.
    y = out[:, :, :c_out, :].reshape(n, 2, 2, c_out, h, w)   # (n, a, b, co, m, q)
    y = jnp.transpose(y, (0, 3, 4, 1, 5, 2))                 # (n, co, m, a, q, b)
    return y.reshape(n, c_out, 2 * h, 2 * w)


def _reference(x, w_t, bias, *, use_bn=True):
    """Pure-JAX reference of the PyTorch forward (for verification)."""
    # ConvTranspose2d == dilated forward conv with flipped/transposed weight.
    w_conv = jnp.transpose(w_t, (1, 0, 2, 3))[:, :, ::-1, ::-1]  # (O, I, 3, 3)
    y = jax.lax.conv_general_dilated(
        x.astype(jnp.float32), w_conv.astype(jnp.float32),
        window_strides=(1, 1),
        padding=((K - 1 - PAD, K - 1 - PAD + OUT_PAD),) * 2,
        lhs_dilation=(STRIDE, STRIDE),
        dimension_numbers=("NCHW", "OIHW", "NCHW"),
        precision=jax.lax.Precision.HIGHEST)
    y = y + bias[None, :, None, None]
    if use_bn:
        mean = jnp.mean(y, axis=(2, 3), keepdims=True)
        var = jnp.mean((y - mean) ** 2, axis=(2, 3), keepdims=True)
        y = (y - mean) / jnp.sqrt(var + EPS)
    return jnp.maximum(y, 0.0)


if __name__ == "__main__":
    key = jax.random.PRNGKey(0)
    kx, kw, kb = jax.random.split(key, 3)

    n, c_in, h, w = 2, 4, 16, 16
    c_out = c_in // 2

    x = jax.random.normal(kx, (n, c_in, h, w), jnp.float32)
    # PyTorch-shaped init: ConvTranspose2d.weight is (in_channels, out_channels, kH, kW).
    fan_in = c_out * K * K
    bound = 1.0 / (fan_in ** 0.5)
    w_t = jax.random.uniform(kw, (c_in, c_out, K, K), jnp.float32,
                             minval=-bound, maxval=bound)
    b = jax.random.uniform(kb, (c_out,), jnp.float32,
                           minval=-bound, maxval=bound)

    # use_bn=True path (default module config).
    out = jax.block_until_ready(expanding_block_forward(x, w_t, b, use_bn=True))
    ref = _reference(x, w_t, b, use_bn=True)
    assert out.shape == (n, c_out, STRIDE * h, STRIDE * w), out.shape
    if not jnp.allclose(out, ref, atol=1e-4, rtol=1e-4):
        raise AssertionError("Pallas kernel (use_bn=True) does not match reference")

    # use_bn=False path (bias + ReLU only).
    out2 = jax.block_until_ready(expanding_block_forward(x, w_t, b, use_bn=False))
    ref2 = _reference(x, w_t, b, use_bn=False)
    if not jnp.allclose(out2, ref2, atol=1e-5, rtol=1e-5):
        raise AssertionError("Pallas kernel (use_bn=False) does not match reference")

    print("KERNEL_OK")
</pallas_src>

<mosaic_0001>
module attributes {stable_mosaic.version = 11 : i64} {
  func.func @_expanding_block_kernel(%arg0: i32, %arg1: i32, %arg2: memref<1x8x256xf32, #tpu.memory_space<vmem>>, %arg3: memref<9x8x8xf32, #tpu.memory_space<vmem>>, %arg4: memref<8x1xf32, #tpu.memory_space<vmem>>, %arg5: memref<1x4x8x256xf32, #tpu.memory_space<vmem>>) attributes {dimension_semantics = [#tpu.dimension_semantics<parallel>, #tpu.dimension_semantics<parallel>], iteration_bounds = array<i64: 2, 1>, scalar_prefetch = 0 : i64, scratch_operands = 0 : i64, tpu.core_type = #tpu.core_type<tc>, window_params = [{transform_indices = @transform_0, window_bounds = array<i64: 1, 8, 256>}, {transform_indices = @transform_1, window_bounds = array<i64: 9, 8, 8>}, {transform_indices = @transform_2, window_bounds = array<i64: 8, 1>}, {transform_indices = @transform_3, window_bounds = array<i64: 1, 4, 8, 256>}]} {
    %c0 = arith.constant 0 : index
    %c0_0 = arith.constant 0 : index
    %c0_1 = arith.constant 0 : index
    %0 = vector.load %arg2[%c0, %c0_0, %c0_1] : memref<1x8x256xf32, #tpu.memory_space<vmem>>, vector<1x8x256xf32>
    %1 = vector.shape_cast %0 : vector<1x8x256xf32> to vector<8x256xf32>
    %2 = tpu.iota {dimensions = array<i32: 1>} : vector<8x256xi32>
    %c16_i32 = arith.constant 16 : i32
    %c0_i32 = arith.constant 0 : i32
    %3 = arith.cmpi eq, %c16_i32, %c0_i32 : i32
    %c1_i32 = arith.constant 1 : i32
    %4 = arith.select %3, %c1_i32, %c16_i32 : i32
    %5 = vector.broadcast %4 : i32 to vector<8x256xi32>
    %6 = arith.remsi %2, %5 : vector<8x256xi32>
    %c0_i32_2 = arith.constant 0 : i32
    %7 = vector.broadcast %c0_i32_2 : i32 to vector<8x256xi32>
    %8 = arith.cmpi ne, %6, %7 : vector<8x256xi32>
    %c0_i32_3 = arith.constant 0 : i32
    %9 = vector.broadcast %c0_i32_3 : i32 to vector<8x256xi32>
    %10 = arith.cmpi slt, %6, %9 : vector<8x256xi32>
    %c0_i32_4 = arith.constant 0 : i32
    %11 = arith.cmpi slt, %4, %c0_i32_4 : i32
    %12 = vector.broadcast %11 : i1 to vector<8x256xi1>
    %13 = vector.broadcast %12 : vector<8x256xi1> to vector<8x256xi1>
    %14 = arith.xori %10, %13 : vector<8x256xi1>
    %15 = arith.andi %14, %8 : vector<8x256xi1>
    %16 = vector.broadcast %4 : i32 to vector<8x256xi32>
    %17 = arith.addi %6, %16 : vector<8x256xi32>
    %18 = arith.select %15, %17, %6 : vector<8x256xi1>, vector<8x256xi32>
    %c15_i32 = arith.constant 15 : i32
    %19 = vector.broadcast %c15_i32 : i32 to vector<8x256xi32>
    %20 = arith.cmpi ne, %18, %19 : vector<8x256xi32>
    %c240_i32 = arith.constant 240 : i32
    %21 = vector.broadcast %c240_i32 : i32 to vector<8x256xi32>
    %22 = arith.cmpi slt, %2, %21 : vector<8x256xi32>
    %c255_i32 = arith.constant 255 : i32
    %23 = tpu.dynamic_rotate %1 by %c255_i32 dim 1 : vector<8x256xf32>, i32 -> vector<8x256xf32>
    %cst = arith.constant 0.000000e+00 : f32
    %24 = vector.broadcast %cst : f32 to vector<8x256xf32>
    %25 = arith.select %20, %23, %24 : vector<8x256xi1>, vector<8x256xf32>
    %c240_i32_5 = arith.constant 240 : i32
    %26 = tpu.dynamic_rotate %1 by %c240_i32_5 dim 1 : vector<8x256xf32>, i32 -> vector<8x256xf32>
    %cst_6 = arith.constant 0.000000e+00 : f32
    %27 = vector.broadcast %cst_6 : f32 to vector<8x256xf32>
    %28 = arith.select %22, %26, %27 : vector<8x256xi1>, vector<8x256xf32>
    %29 = arith.andi %20, %22 : vector<8x256xi1>
    %c239_i32 = arith.constant 239 : i32
    %30 = tpu.dynamic_rotate %1 by %c239_i32 dim 1 : vector<8x256xf32>, i32 -> vector<8x256xf32>
    %cst_7 = arith.constant 0.000000e+00 : f32
    %31 = vector.broadcast %cst_7 : f32 to vector<8x256xf32>
    %32 = arith.select %29, %30, %31 : vector<8x256xi1>, vector<8x256xf32>
    %c4 = arith.constant 4 : index
    %c0_8 = arith.constant 0 : index
    %c0_9 = arith.constant 0 : index
    %33 = vector.load %arg3[%c4, %c0_8, %c0_9] : memref<9x8x8xf32, #tpu.memory_space<vmem>>, vector<1x8x8xf32>
    %34 = vector.shape_cast %33 : vector<1x8x8xf32> to vector<8x8xf32>
    %cst_10 = arith.constant dense<0.000000e+00> : vector<8x256xf32>
    %35 = tpu.matmul %34, %1, %cst_10 {dimension_numbers = #tpu.dot_dimension_numbers<[1], [0], [0], [1], [0, 0, 1, 1], [], []>, precision = #tpu.contract_precision<fp32>} : vector<8x8xf32>, vector<8x256xf32>, vector<8x256xf32> -> vector<8x256xf32>
    %c3 = arith.constant 3 : index
    %c0_11 = arith.constant 0 : index
    %c0_12 = arith.constant 0 : index
    %36 = vector.load %arg3[%c3, %c0_11, %c0_12] : memref<9x8x8xf32, #tpu.memory_space<vmem>>, vector<1x8x8xf32>
    %37 = vector.shape_cast %36 : vector<1x8x8xf32> to vector<8x8xf32>
    %cst_13 = arith.constant dense<0.000000e+00> : vector<8x256xf32>
    %38 = tpu.matmul %37, %25, %cst_13 {dimension_numbers = #tpu.dot_dimension_numbers<[1], [0], [0], [1], [0, 0, 1, 1], [], []>, precision = #tpu.contract_precision<fp32>} : vector<8x8xf32>, vector<8x256xf32>, vector<8x256xf32> -> vector<8x256xf32>
    %c5 = arith.constant 5 : index
    %c0_14 = arith.constant 0 : index
    %c0_15 = arith.constant 0 : index
    %39 = vector.load %arg3[%c5, %c0_14, %c0_15] : memref<9x8x8xf32, #tpu.memory_space<vmem>>, vector<1x8x8xf32>
    %40 = vector.shape_cast %39 : vector<1x8x8xf32> to vector<8x8xf32>
    %cst_16 = arith.constant dense<0.000000e+00> : vector<8x256xf32>
    %41 = tpu.matmul %40, %1, %cst_16 {dimension_numbers = #tpu.dot_dimension_numbers<[1], [0], [0], [1], [0, 0, 1, 1], [], []>, precision = #tpu.contract_precision<fp32>} : vector<8x8xf32>, vector<8x256xf32>, vector<8x256xf32> -> vector<8x256xf32>
    %42 = arith.addf %38, %41 : vector<8x256xf32>
    %c1 = arith.constant 1 : index
    %c0_17 = arith.constant 0 : index
    %c0_18 = arith.constant 0 : index
    %43 = vector.load %arg3[%c1, %c0_17, %c0_18] : memref<9x8x8xf32, #tpu.memory_space<vmem>>, vector<1x8x8xf32>
    %44 = vector.shape_cast %43 : vector<1x8x8xf32> to vector<8x8xf32>
    %cst_19 = arith.constant dense<0.000000e+00> : vector<8x256xf32>
    %45 = tpu.matmul %44, %28, %cst_19 {dimension_numbers = #tpu.dot_dimension_numbers<[1], [0], [0], [1], [0, 0, 1, 1], [], []>, precision = #tpu.contract_precision<fp32>} : vector<8x8xf32>, vector<8x256xf32>, vector<8x256xf32> -> vector<8x256xf32>
    %c7 = arith.constant 7 : index
    %c0_20 = arith.constant 0 : index
    %c0_21 = arith.constant 0 : index
    %46 = vector.load %arg3[%c7, %c0_20, %c0_21] : memref<9x8x8xf32, #tpu.memory_space<vmem>>, vector<1x8x8xf32>
    %47 = vector.shape_cast %46 : vector<1x8x8xf32> to vector<8x8xf32>
    %cst_22 = arith.constant dense<0.000000e+00> : vector<8x256xf32>
    %48 = tpu.matmul %47, %1, %cst_22 {dimension_numbers = #tpu.dot_dimension_numbers<[1], [0], [0], [1], [0, 0, 1, 1], [], []>, precision = #tpu.contract_precision<fp32>} : vector<8x8xf32>, vector<8x256xf32>, vector<8x256xf32> -> vector<8x256xf32>
    %49 = arith.addf %45, %48 : vector<8x256xf32>
    %c0_23 = arith.constant 0 : index
    %c0_24 = arith.constant 0 : index
    %c0_25 = arith.constant 0 : index
    %50 = vector.load %arg3[%c0_23, %c0_24, %c0_25] : memref<9x8x8xf32, #tpu.memory_space<vmem>>, vector<1x8x8xf32>
    %51 = vector.shape_cast %50 : vector<1x8x8xf32> to vector<8x8xf32>
    %cst_26 = arith.constant dense<0.000000e+00> : vector<8x256xf32>
    %52 = tpu.matmul %51, %32, %cst_26 {dimension_numbers = #tpu.dot_dimension_numbers<[1], [0], [0], [1], [0, 0, 1, 1], [], []>, precision = #tpu.contract_precision<fp32>} : vector<8x8xf32>, vector<8x256xf32>, vector<8x256xf32> -> vector<8x256xf32>
    %c2 = arith.constant 2 : index
    %c0_27 = arith.constant 0 : index
    %c0_28 = arith.constant 0 : index
    %53 = vector.load %arg3[%c2, %c0_27, %c0_28] : memref<9x8x8xf32, #tpu.memory_space<vmem>>, vector<1x8x8xf32>
    %54 = vector.shape_cast %53 : vector<1x8x8xf32> to vector<8x8xf32>
    %cst_29 = arith.constant dense<0.000000e+00> : vector<8x256xf32>
    %55 = tpu.matmul %54, %28, %cst_29 {dimension_numbers = #tpu.dot_dimension_numbers<[1], [0], [0], [1], [0, 0, 1, 1], [], []>, precision = #tpu.contract_precision<fp32>} : vector<8x8xf32>, vector<8x256xf32>, vector<8x256xf32> -> vector<8x256xf32>
    %56 = arith.addf %52, %55 : vector<8x256xf32>
    %c6 = arith.constant 6 : index
    %c0_30 = arith.constant 0 : index
    %c0_31 = arith.constant 0 : index
    %57 = vector.load %arg3[%c6, %c0_30, %c0_31] : memref<9x8x8xf32, #tpu.memory_space<vmem>>, vector<1x8x8xf32>
    %58 = vector.shape_cast %57 : vector<1x8x8xf32> to vector<8x8xf32>
    %cst_32 = arith.constant dense<0.000000e+00> : vector<8x256xf32>
    %59 = tpu.matmul %58, %25, %cst_32 {dimension_numbers = #tpu.dot_dimension_numbers<[1], [0], [0], [1], [0, 0, 1, 1], [], []>, precision = #tpu.contract_precision<fp32>} : vector<8x8xf32>, vector<8x256xf32>, vector<8x256xf32> -> vector<8x256xf32>
    %60 = arith.addf %56, %59 : vector<8x256xf32>
    %c8 = arith.constant 8 : index
    %c0_33 = arith.constant 0 : index
    %c0_34 = arith.constant 0 : index
    %61 = vector.load %arg3[%c8, %c0_33, %c0_34] : memref<9x8x8xf32, #tpu.memory_space<vmem>>, vector<1x8x8xf32>
    %62 = vector.shape_cast %61 : vector<1x8x8xf32> to vector<8x8xf32>
    %cst_35 = arith.constant dense<0.000000e+00> : vector<8x256xf32>
    %63 = tpu.matmul %62, %1, %cst_35 {dimension_numbers = #tpu.dot_dimension_numbers<[1], [0], [0], [1], [0, 0, 1, 1], [], []>, precision = #tpu.contract_precision<fp32>} : vector<8x8xf32>, vector<8x256xf32>, vector<8x256xf32> -> vector<8x256xf32>
    %64 = arith.addf %60, %63 : vector<8x256xf32>
    %65 = arith.addf %35, %42 : vector<8x256xf32>
    %66 = arith.addf %65, %49 : vector<8x256xf32>
    %67 = arith.addf %66, %64 : vector<8x256xf32>
    %cst_36 = arith.constant dense<0.000000e+00> : vector<8xf32>
    %68 = vector.multi_reduction <add>, %67, %cst_36 [1] : vector<8x256xf32> to vector<8xf32>
    %69 = vector.shape_cast %68 : vector<8xf32> to vector<8x1xf32>
    %cst_37 = arith.constant 9.765625E-4 : f32
    %70 = vector.broadcast %cst_37 : f32 to vector<8x1xf32>
    %71 = arith.mulf %69, %70 : vector<8x1xf32>
    %72 = vector.broadcast %71 : vector<8x1xf32> to vector<8x256xf32>
    %73 = arith.subf %35, %72 : vector<8x256xf32>
    %74 = vector.broadcast %71 : vector<8x1xf32> to vector<8x256xf32>
    %75 = arith.subf %42, %74 : vector<8x256xf32>
    %76 = vector.broadcast %71 : vector<8x1xf32> to vector<8x256xf32>
    %77 = arith.subf %49, %76 : vector<8x256xf32>
    %78 = vector.broadcast %71 : vector<8x1xf32> to vector<8x256xf32>
    %79 = arith.subf %64, %78 : vector<8x256xf32>
    %80 = arith.mulf %73, %73 : vector<8x256xf32>
    %81 = arith.mulf %75, %75 : vector<8x256xf32>
    %82 = arith.addf %80, %81 : vector<8x256xf32>
    %83 = arith.mulf %77, %77 : vector<8x256xf32>
    %84 = arith.addf %82, %83 : vector<8x256xf32>
    %85 = arith.mulf %79, %79 : vector<8x256xf32>
    %86 = arith.addf %84, %85 : vector<8x256xf32>
    %cst_38 = arith.constant dense<0.000000e+00> : vector<8xf32>
    %87 = vector.multi_reduction <add>, %86, %cst_38 [1] : vector<8x256xf32> to vector<8xf32>
    %88 = vector.shape_cast %87 : vector<8xf32> to vector<8x1xf32>
    %cst_39 = arith.constant 9.765625E-4 : f32
    %89 = vector.broadcast %cst_39 : f32 to vector<8x1xf32>
    %90 = arith.mulf %88, %89 : vector<8x1xf32>
    %cst_40 = arith.constant 9.99999974E-6 : f32
    %91 = vector.broadcast %cst_40 : f32 to vector<8x1xf32>
    %92 = arith.addf %90, %91 : vector<8x1xf32>
    %93 = math.rsqrt %92 : vector<8x1xf32>
    %94 = vector.broadcast %93 : vector<8x1xf32> to vector<8x256xf32>
    %95 = arith.mulf %73, %94 : vector<8x256xf32>
    %cst_41 = arith.constant 0.000000e+00 : f32
    %96 = vector.broadcast %cst_41 : f32 to vector<8x256xf32>
    %97 = arith.maximumf %95, %96 : vector<8x256xf32>
    %c0_42 = arith.constant 0 : index
    %c0_43 = arith.constant 0 : index
    %c0_44 = arith.constant 0 : index
    %c0_45 = arith.constant 0 : index
    %98 = vector.load %arg5[%c0_42, %c0_43, %c0_44, %c0_45] : memref<1x4x8x256xf32, #tpu.memory_space<vmem>>, vector<1x1x8x256xf32>
    %99 = vector.shape_cast %98 : vector<1x1x8x256xf32> to vector<8x256xf32>
    %100 = vector.shape_cast %97 : vector<8x256xf32> to vector<1x1x8x256xf32>
    tpu.vector_store %arg5[%c0_42, %c0_43, %c0_44, %c0_45], %100 {strides = array<i32>} : memref<1x4x8x256xf32, #tpu.memory_space<vmem>>, vector<1x1x8x256xf32>,
    %101 = vector.broadcast %93 : vector<8x1xf32> to vector<8x256xf32>
    %102 = arith.mulf %75, %101 : vector<8x256xf32>
    %cst_46 = arith.constant 0.000000e+00 : f32
    %103 = vector.broadcast %cst_46 : f32 to vector<8x256xf32>
    %104 = arith.maximumf %102, %103 : vector<8x256xf32>
    %c0_47 = arith.constant 0 : index
    %c1_48 = arith.constant 1 : index
    %c0_49 = arith.constant 0 : index
    %c0_50 = arith.constant 0 : index
    %105 = vector.load %arg5[%c0_47, %c1_48, %c0_49, %c0_50] : memref<1x4x8x256xf32, #tpu.memory_space<vmem>>, vector<1x1x8x256xf32>
    %106 = vector.shape_cast %105 : vector<1x1x8x256xf32> to vector<8x256xf32>
    %107 = vector.shape_cast %104 : vector<8x256xf32> to vector<1x1x8x256xf32>
    tpu.vector_store %arg5[%c0_47, %c1_48, %c0_49, %c0_50], %107 {strides = array<i32>} : memref<1x4x8x256xf32, #tpu.memory_space<vmem>>, vector<1x1x8x256xf32>,
    %108 = vector.broadcast %93 : vector<8x1xf32> to vector<8x256xf32>
    %109 = arith.mulf %77, %108 : vector<8x256xf32>
    %cst_51 = arith.constant 0.000000e+00 : f32
    %110 = vector.broadcast %cst_51 : f32 to vector<8x256xf32>
    %111 = arith.maximumf %109, %110 : vector<8x256xf32>
    %c0_52 = arith.constant 0 : index
    %c2_53 = arith.constant 2 : index
    %c0_54 = arith.constant 0 : index
    %c0_55 = arith.constant 0 : index
    %112 = vector.load %arg5[%c0_52, %c2_53, %c0_54, %c0_55] : memref<1x4x8x256xf32, #tpu.memory_space<vmem>>, vector<1x1x8x256xf32>
    %113 = vector.shape_cast %112 : vector<1x1x8x256xf32> to vector<8x256xf32>
    %114 = vector.shape_cast %111 : vector<8x256xf32> to vector<1x1x8x256xf32>
    tpu.vector_store %arg5[%c0_52, %c2_53, %c0_54, %c0_55], %114 {strides = array<i32>} : memref<1x4x8x256xf32, #tpu.memory_space<vmem>>, vector<1x1x8x256xf32>,
    %115 = vector.broadcast %93 : vector<8x1xf32> to vector<8x256xf32>
    %116 = arith.mulf %79, %115 : vector<8x256xf32>
    %cst_56 = arith.constant 0.000000e+00 : f32
    %117 = vector.broadcast %cst_56 : f32 to vector<8x256xf32>
    %118 = arith.maximumf %116, %117 : vector<8x256xf32>
    %c0_57 = arith.constant 0 : index
    %c3_58 = arith.constant 3 : index
    %c0_59 = arith.constant 0 : index
    %c0_60 = arith.constant 0 : index
    %119 = vector.load %arg5[%c0_57, %c3_58, %c0_59, %c0_60] : memref<1x4x8x256xf32, #tpu.memory_space<vmem>>, vector<1x1x8x256xf32>
    %120 = vector.shape_cast %119 : vector<1x1x8x256xf32> to vector<8x256xf32>
    %121 = vector.shape_cast %118 : vector<8x256xf32> to vector<1x1x8x256xf32>
    tpu.vector_store %arg5[%c0_57, %c3_58, %c0_59, %c0_60], %121 {strides = array<i32>} : memref<1x4x8x256xf32, #tpu.memory_space<vmem>>, vector<1x1x8x256xf32>,
    return
  }
  func.func @transform_0(%arg0: i32, %arg1: i32) -> (i32, i32, i32) {
    %c0_i32 = arith.constant 0 : i32
    %c0_i32_0 = arith.constant 0 : i32
    %c0_i32_1 = arith.constant 0 : i32
    return %arg0, %c0_i32, %c0_i32_0 : i32, i32, i32
  }
  func.func @transform_1(%arg0: i32, %arg1: i32) -> (i32, i32, i32) {
    %c0_i32 = arith.constant 0 : i32
    %c0_i32_0 = arith.constant 0 : i32
    %c0_i32_1 = arith.constant 0 : i32
    return %c0_i32, %arg1, %c0_i32_0 : i32, i32, i32
  }
  func.func @transform_2(%arg0: i32, %arg1: i32) -> (i32, i32) {
    %c0_i32 = arith.constant 0 : i32
    %c0_i32_0 = arith.constant 0 : i32
    return %arg1, %c0_i32 : i32, i32
  }
  func.func @transform_3(%arg0: i32, %arg1: i32) -> (i32, i32, i32, i32) {
    %c0_i32 = arith.constant 0 : i32
    %c0_i32_0 = arith.constant 0 : i32
    %c0_i32_1 = arith.constant 0 : i32
    return %arg0, %c0_i32, %arg1, %c0_i32_0 : i32, i32, i32, i32
  }
}

</mosaic_0001>

<bundles_post_ra>
// kernel: tpu_custom_call.1
= control target key start
LH: loop header
LB: loop body
LE: loop exit
PB: predicated region body
PF: predicated region fallthrough
CT: control target
= control target key end

     0   :  { %8 = vsyncpa [#allocation3], 0  ;;  %s5479_s0 = inlined_call_operand.vmem [shape: f32[2,8,256], index: 0, kind: input, shape index: {}]   ;;  %s5480_s1 = inlined_call_operand.vmem [shape: f32[9,8,8], index: 1, kind: input, shape index: {}]   ;;  %s5481_s2 = inlined_call_operand.vmem [shape: f32[8,1], index: 2, kind: input, shape index: {}]   ;;  %s5482_s3 = inlined_call_operand.hbm [shape: f32[2,4,8,256], index: 3, kind: output, shape index: {}]  }
   0x1   :  { %10 = vsyncpa [#allocation3 + $0x1], 0  ;;  %s4998_s12 = smov 0   ;;  %s5000_s13 = smov 0  }
   0x2   :  { %s5002_s14 = smov 0   ;;  %s5004_s15 = smov 0  }
   0x3   :  { %s5006_s16 = smov 0   ;;  %s5008_s17 = smov 0  }
   0x4 LB: > { %s4697_s2 = sadd.s32 4294967295, %s4969_s17   ;;  %s4698_s18 = sadd.s32 4294967294, %s4969_s17   ;;  %s4969_s17 = sphi %s5008_s17, %s16_s17   ;;  %s4965_s16 = sphi %s5006_s16, %s5493_s16   ;;  %s4961_s15 = sphi %s5004_s15, %s5492_s15   ;;  %s4957_s14 = sphi %s5002_s14, %s5491_s14   ;;  %s4953_s13 = sphi %s5000_s13, %s5490_s13   ;;  %s4949_s12 = sphi %s4998_s12, %s5489_s12  }
   0x5   : > { %s28_s19 = sadd.s32 1, %s4965_s16  ;;  %s115_s20 = sadd.s32 1, %s4957_s14 }
   0x6   : > { %p30_p0 = scmp.ge.s32.totalorder %s28_s19, 2  ;;  %p125_p1 = scmp.ne.s32.totalorder %s4957_s14, %s4953_s13 }
   0x7   : > { %p126_p2 = scmp.eq.s32.totalorder %s4697_s2, 1  ;;  %p131_p3 = scmp.ne.s32.totalorder %s4953_s13, %s4949_s12 }
   0x8   : > { %s5495_s19 = smov (%p30_p0, %s28_s19), 0  ;;  %p132_p5 = scmp.eq.s32.totalorder %s4698_s18, 1 }
   0x9   : > { %p5038_p4 = por %p126_p2, %p125_p1  ;;  %s110_s22 = ssub.s32 %s4965_s16, %s5495_s19 }
   0xa   : > { %p4703_p6 = scmp.ge.s32.totalorder %s4969_s17, 1  ;;  %p113_p7 = scmp.eq.s32.totalorder %s110_s22, 0 }
   0xb   : > { %p5045_p8 = por %p132_p5, %p131_p3  ;;  %p172_p9 = scmp.lt.s32.totalorder %s4969_s17, 3 }
   0xc   : > { %s5051_s24 = scalar_select %p113_p7, %s4957_s14, %s115_s20  }
   0xd   : > { %p173_p10 = pnand %p4703_p6, %p172_p9 }
   0xe   : > { %p204_p11 = scmp.lt.s32.totalorder (!%p173_p10), %s4961_s15, 1  ;;  %v4707_v0 = vld [vmem:[%s5480_s1 + $0x20] sm:$0xff] (!%p173_p10)  ;;  %vm281_vm0 = vcmask (!%p173_p10), 64512   ;;  %v4971_v1 = vmov (!%p173_p10), 0.0   ;;  %s4972_s5 = smov (!%p173_p10), 127   ;;  %v4709_v20 = vld [vmem:[%s5480_s1 + $0x28] sm:$0xff] (!%p173_p10)  ;;  %v219_v28 = vlaneseq (!%p173_p10) }
   0xf   : > { %176 = sbr.rel (%p173_p10) target bundleno = 909 (0x38d), region = 32  ;;  %351 = vmatprep.mubr.f32.mxu0 (!%p173_p10), %v4971_v1  ;;  %v283_v2 = vsel (!%p173_p10), %vm281_vm0, %v4707_v0, 0  ;;  %1528 = vmatprep.mubr.f32.mxu1 (!%p173_p10), %v4971_v1  ;;  %s4973_s6 = smov (!%p173_p10), 112   ;;  %v755_v21 = vsel (!%p173_p10), %vm281_vm0, %v4709_v20, 0  ;;  %v4708_v27 = vld [vmem:[%s5480_s1 + $0x18] sm:$0xff] (!%p173_p10)  ;;  %v4712_v50 = vld [vmem:[%s5480_s1 + $0x10] sm:$0xff] (!%p173_p10) }
  0x10   : > { %v352_v3 = vand.u32 (!%p173_p10), 4294901760, %v283_v2  ;;  %s4974_s7 = smov (!%p173_p10), 111   ;;  %v824_v22 = vand.u32 (!%p173_p10), 4294901760, %v755_v21  ;;  %v1223_v29 = vsel (!%p173_p10), %vm281_vm0, %v4708_v27, 0  ;;  %v5132_v30 = vand.u32 (!%p173_p10), 127, %v219_v28  ;;  %v4711_v47 = vld [vmem:[%s5480_s1 + $0x38] sm:$0xff] (!%p173_p10) }
  0x11   : > { %v5134_v31 = vand.u32 (!%p173_p10), 4294901760, %v1223_v29  ;;  %v1695_v55 = vsel (!%p173_p10), %vm281_vm0, %v4711_v47, 0  ;;  %v2634_v58 = vsel (!%p173_p10), %vm281_vm0, %v4712_v50, 0  ;;  %s4727_s8 = sshll.u32 (!%p173_p10), %s4961_s15, 10  ;;  %s4975_s22 = smov (!%p173_p10), [#allocation2]  }
  0x12   : > { %v353_v4 = vsub.f32 (!%p173_p10), %v283_v2, %v352_v3  ;;  %v825_v23 = vsub.f32 (!%p173_p10), %v755_v21, %v824_v22  ;;  %v5137_v32 = vadd.s32 (!%p173_p10), 128, %v5132_v30  ;;  %v226_v34 = vand.u32 (!%p173_p10), 15, %v5132_v30  ;;  %s5427_s18 = scalar_lea.hbm (!%p173_p10), %s5482_s3, %s4727_s8  ;;  %s4895_s25 = sshll.u32 (!%p173_p10), %s4975_s22, 4  ;;  %s4896_s25 = int_to_ptr.vmem [resolvable:$false] %s4895_s25 }
  0x13   : > { %v5140_v33 = vsub.f32 (!%p173_p10), %v1223_v29, %v5134_v31  ;;  %vm254_vm1 = vcmp.lt.s32.totalorder (!%p173_p10), %v5132_v30, 127  ;;  %vm263_vm2 = vcmp.lt.s32.totalorder (!%p173_p10), %v5132_v30, 112  ;;  %v5195_v62 = vand.u32 (!%p173_p10), 4294901760, %v1695_v55  ;;  %s4897_s26 = scalar_lea.vmem (!%p173_p10), %s4896_s25, 2048 }
  0x14   : > { %v354_v7 = vand.u32 (!%p173_p10), 4294901760, %v353_v4  ;;  %v826_v24 = vand.u32 (!%p173_p10), 4294901760, %v825_v23  ;;  %v233_v35 = vand.u32 (!%p173_p10), 15, %v5137_v32  ;;  %vm5147_vm3 = vcmp.ne.s32.totalorder (!%p173_p10), %v226_v34, 15 }
  0x15   : > { %v1294_v36 = vand.u32 (!%p173_p10), 4294901760, %v5140_v33  ;;  %vm249_vm5 = vcmp.lt.s32.totalorder (!%p173_p10), %v5137_v32, 240  ;;  %v5201_v0 = vand.u32 (!%p173_p10), 4294901760, %v2634_v58  ;;  %vm274_vm6 = vcmp.lt.s32.totalorder (!%p173_p10), %v5132_v30, 111  ;;  %v4710_v32 = vld [vmem:[%s5480_s1 + $0x8] sm:$0xff] (!%p173_p10) }
  0x16   : > { %s205_s27 = scalar_select %p204_p11, %s4961_s15, 1  ;;  %v355_v10 = vsub.f32 %v353_v4, %v354_v7  ;;  %v827_v25 = vsub.f32 %v825_v23, %v826_v24  ;;  %vm5151_vm4 = vcmp.ne.s32.totalorder %v233_v35, 15 }
  0x17   : > { %v1295_v41 = vsub.f32 %v5140_v33, %v1294_v36  ;;  %vm269_vm7 = vmand %vm5151_vm4, %vm249_vm5 }
  0x18   : > { %s4726_s28 = sshll.u32 %s205_s27, 4  ;;  %v356_v13 = vand.u32 4294901760, %v355_v10  ;;  %v828_v26 = vand.u32 4294901760, %v827_v25  ;;  %v5220_v10 = vsub.f32 %v1695_v55, %v5195_v62 }
  0x19   : > { %s208_s4 = scalar_lea.vmem %s5479_s0, %s4726_s28  ;;  %v1296_v53 = vand.u32 4294901760, %v1295_v41  ;;  %v2163_v41 = vsel %vm281_vm0, %v4710_v32, 0 }
  0x1a   : > { %v217_v5 = vld [vmem:[%s208_s4] sm:$0xff]  ;;  %v218_v6 = vld [vmem:[%s208_s4 + $0x8] sm:$0xff]  ;;  %v1766_v20 = vand.u32 4294901760, %v5220_v10 }
  0x1b   : > { %250 = vrot.lane.b32.xlu0 %v217_v5, %s4972_s5  ;;  %v5064_v8 = vand.u32 4294901760, %v217_v5  ;;  %v5066_v9 = vand.u32 4294901760, %v218_v6  ;;  %259 = vrot.lane.b32.xlu1 %v217_v5, %s4973_s6 }
  0x1d   : > { %v5069_v11 = vsub.f32 %v217_v5, %v5064_v8  ;;  %v5072_v12 = vsub.f32 %v218_v6, %v5066_v9  ;;  %286 = vmatprep.subr.mxu0 %v5066_v9 }
  0x1e   : > { %288 = vmatpush1.msra.mxu0 %v5064_v8 }
  0x1f   : > { %252 = vrot.lane.b32.xlu0 %v218_v6, %s4972_s5  ;;  %261 = vrot.lane.b32.xlu1 %v218_v6, %s4973_s6  ;;  %v5077_v14 = vand.u32 4294901760, %v5072_v12  ;;  %v5080_v15 = vand.u32 4294901760, %v5069_v11  ;;  %s201_s6 = sand.u32 1, %s4953_s13  }
  0x20   : > { %357 = vmatmul.mubr.f32.vlgmr.msra.gmra.mrb[0].mxu0 %v356_v13  ;;  %v5223_v13 = vsub.f32 %v2634_v58, %v5201_v0  ;;  %s5433_s15 = scalar_lea.sflag [#allocation3], %s201_s6 }
  0x21   : > { %v366_v16 = vsub.f32 %v5072_v12, %v5077_v14  ;;  %v372_v17 = vsub.f32 %v5069_v11, %v5080_v15  ;;  %437 = vmatprep.mubr.f32.mxu0 %v4971_v1 }
  0x22   : > { %v2705_v21 = vand.u32 4294901760, %v5223_v13 }
  0x23   : > { %v5087_v18 = vand.u32 4294901760, %v366_v16  ;;  %v5089_v19 = vand.u32 4294901760, %v372_v17  ;;  %272 = vrot.lane.b32.xlu1 %v218_v6, %s4974_s7  ;;  %270 = vrot.lane.b32.xlu0 %v217_v5, %s4974_s7  ;;  %s4704_s7 = sshll.u32 %s201_s6, 6 }
  0x24   : > { %v2706_v25 = vsub.f32 %v5223_v13, %v2705_v21  ;;  %s203_s9 = scalar_lea.vmem [#allocation2], %s4704_s7 }
  0x25   : > { %368 = vmatprep.subr.mxu0 %v5087_v18  ;;  %s4594_s10 = sshll.u32 %s203_s9, 4  ;;  %s5429_s10 = int_to_ptr.vmem [resolvable:$true] %s4594_s10 }
  0x26   : > { %374 = vmatpush1.msra.mxu0 %v5089_v19  ;;  %v2707_v29 = vand.u32 4294901760, %v2706_v25  ;;  %s4891_s20 = scalar_lea.vmem %s5429_s10, 1024  ;;  %p4898_p1 = scmp.lt.s32.totalorder %s5429_s10, %s4896_s25 }
  0x27   : > { %447 = vmatprep.subr.mxu0 %v5072_v12  ;;  %p4892_p12 = scmp.ne.s32.totalorder %s5429_s10, %s4891_s20  ;;  %p4899_p2 = scmp.lt.s32.totalorder %s4897_s26, %s4891_s20 }
  0x28   : > { %439 = vmatmul.mubr.f32.vlgmr.msra.gmra.mrb[0].mxu0 %v352_v3 }
  0x29   : > { %450 = vmatpush1.msra.mxu0 %v5069_v11  ;;  %513 = vmatprep.mubr.f32.mxu0 %v4971_v1  ;;  %p4893_p13 = pnand %p4892_p12, %p5038_p4  ;;  %p4900_p3 = por %p4899_p2, %p4898_p1 }
  0x2a   : > { %523 = vmatprep.subr.mxu0 %v5066_v9 }
  0x2b   : > { %p4894_p0 = pneg %p4893_p13 }
  0x2d   : > { %p4901_p5 = pnand %p4900_p3, %p4894_p0 }
  0x30   : > { %516 = vmatmul.mubr.f32.vlgmr.msra.gmra.mrb[0].mxu0 %v353_v4 }
  0x31   : > { %525 = vmatpush1.msra.mxu0 %v5064_v8  ;;  %588 = vmatprep.mubr.f32.mxu0 %v4971_v1 }
  0x32   : > { %601 = vmatprep.subr.mxu0 %v5077_v14 }
  0x38   : > { %592 = vmatmul.mubr.f32.vlgmr.msra.gmra.mrb[0].mxu0 %v354_v7 }
  0x39   : > { %605 = vmatpush1.msra.mxu0 %v5080_v15  ;;  %668 = vmatprep.mubr.f32.mxu0 %v4971_v1 }
  0x3a   : > { %677 = vmatprep.subr.mxu0 %v5066_v9 }
  0x40   : > { %670 = vmatmul.mubr.f32.vlgmr.msra.gmra.mrb[0].mxu0 %v352_v3 }
  0x41   : > { %679 = vmatpush1.msra.mxu0 %v5064_v8  ;;  %742 = vmatprep.mubr.f32.mxu0 %v4971_v1 }
  0x42   : > { %758 = vmatprep.subr.mxu0 %v5066_v9 }
  0x48   : > { %744 = vmatmul.mubr.f32.vlgmr.msra.gmra.mrb[0].mxu0 %v352_v3 }
  0x49   : > { %760 = vmatpush1.msra.mxu0 %v5064_v8  ;;  %823 = vmatprep.mubr.f32.mxu0 %v4971_v1 }
  0x4a   : > { %840 = vmatprep.subr.mxu0 %v5087_v18 }
  0x4c   : > { %829 = vmatmul.mubr.f32.vlgmr.msra.gmra.mrb[2].mxu0 %v828_v26 }
  0x4d   : > { %846 = vmatpush1.msra.mxu0 %v5089_v19  ;;  %909 = vmatprep.mubr.f32.mxu0 %v4971_v1 }
  0x4e   : > { %919 = vmatprep.subr.mxu0 %v5072_v12 }
  0x54   : > { %911 = vmatmul.mubr.f32.vlgmr.msra.gmra.mrb[2].mxu0 %v824_v22 }
  0x55   : > { %922 = vmatpush1.msra.mxu0 %v5069_v11  ;;  %985 = vmatprep.mubr.f32.mxu0 %v4971_v1 }
  0x56   : > { %995 = vmatprep.subr.mxu0 %v5066_v9 }
  0x5c   : > { %988 = vmatmul.mubr.f32.vlgmr.msra.gmra.mrb[2].mxu0 %v825_v23 }
  0x5d   : > { %997 = vmatpush1.msra.mxu0 %v5064_v8  ;;  %1060 = vmatprep.mubr.f32.mxu0 %v4971_v1 }
  0x5e   : > { %1073 = vmatprep.subr.mxu0 %v5077_v14 }
  0x64   : > { %1064 = vmatmul.mubr.f32.vlgmr.msra.gmra.mrb[2].mxu0 %v826_v24  ;;  %v1767_v24 = vsub.f32 %v5220_v10, %v1766_v20 }
  0x65   : > { %1077 = vmatpush1.msra.mxu0 %v5080_v15  ;;  %1140 = vmatprep.mubr.f32.mxu0 %v4971_v1 }
  0x66   : > { %1149 = vmatprep.subr.mxu0 %v5066_v9  ;;  %v1768_v27 = vand.u32 4294901760, %v1767_v24 }
  0x6c   : > { %1142 = vmatmul.mubr.f32.vlgmr.msra.gmra.mrb[2].mxu0 %v824_v22 }
  0x6d   : > { %1151 = vmatpush1.msra.mxu0 %v5064_v8  ;;  %1214 = vmatprep.mubr.f32.mxu0 %v4971_v1 }
  0x74   : > { %1216 = vmatmul.mubr.f32.vlgmr.msra.gmra.mrb[2].mxu0 %v824_v22 }
  0x75   : > { %1291 = vmatprep.mubr.f32.mxu0 %v4971_v1 }
  0x8d   : > { %v251_v37 = vpop.permute.xlu0 %250  ;;  %v260_v38 = vpop.permute.xlu1 %259 }
  0x91   : > { %v253_v42 = vpop.permute.xlu0 %252  ;;  %v262_v43 = vpop.permute.xlu1 %261 }
  0x92   : > { %v255_v44 = vsel %vm254_vm1, %v251_v37, %v253_v42  ;;  %v256_v45 = vsel %vm254_vm1, %v253_v42, %v251_v37  ;;  %v265_v46 = vsel %vm263_vm2, %v262_v43, %v260_v38  ;;  %v264_v63 = vsel %vm263_vm2, %v260_v38, %v262_v43  ;;  %v2630_v38 = vld [vmem:[%s5480_s1] sm:$0xff] }
  0x93   : > { %v257_v48 = vsel %vm5147_vm3, %v255_v44, 0.0  ;;  %v258_v49 = vsel %vm5151_vm4, %v256_v45, 0.0  ;;  %v267_v54 = vsel %vm249_vm5, %v265_v46, 0.0  ;;  %v5212_v5 = vand.u32 4294901760, %v264_v63 }
  0x94   : > { %v5169_v51 = vand.u32 4294901760, %v258_v49  ;;  %v5171_v52 = vand.u32 4294901760, %v257_v48  ;;  %v5187_v59 = vand.u32 4294901760, %v267_v54  ;;  %v3102_v42 = vsel %vm281_vm0, %v2630_v38, 0 }
  0x95   : > { %v5231_v17 = vsub.f32 %v264_v63, %v5212_v5  ;;  %v5315_v44 = vand.u32 4294901760, %v2163_v41  ;;  %v5317_v45 = vand.u32 4294901760, %v3102_v42 }
  0x96   : > { %v5177_v56 = vsub.f32 %v258_v49, %v5169_v51  ;;  %v5180_v57 = vsub.f32 %v257_v48, %v5171_v52  ;;  %1226 = vmatprep.subr.mxu0 %v5169_v51  ;;  %1463 = vmatprep.subr.mxu1 %v5169_v51  ;;  %v5209_v4 = vsub.f32 %v267_v54, %v5187_v59 }
  0x97   : > { %1228 = vmatpush1.msra.mxu0 %v5171_v52  ;;  %1465 = vmatpush1.msra.mxu1 %v5171_v52  ;;  %v5246_v23 = vand.u32 4294901760, %v5231_v17  ;;  %v2233_v48 = vsub.f32 %v2163_v41, %v5315_v44  ;;  %v3172_v39 = vsub.f32 %v3102_v42, %v5317_v45 }
  0x98   : > { %1297 = vmatmul.mubr.f32.vlgmr.msra.gmra.mrb[2].mxu0 %v1296_v53  ;;  %1532 = vmatmul.mubr.f32.vlgmr.msra.gmra.mrb[0].mxu1 %v1294_v36  ;;  %v5190_v60 = vand.u32 4294901760, %v5177_v56  ;;  %v5193_v61 = vand.u32 4294901760, %v5180_v57  ;;  %v5228_v16 = vand.u32 4294901760, %v5209_v4 }
  0x99   : > { %1377 = vmatprep.mubr.f32.mxu0 %v4971_v1  ;;  %1608 = vmatprep.mubr.f32.mxu1 %v4971_v1  ;;  %v2252_v28 = vsub.f32 %v5231_v17, %v5246_v23  ;;  %v2234_v53 = vand.u32 4294901760, %v2233_v48  ;;  %v3173_v54 = vand.u32 4294901760, %v3172_v39 }
  0x9a   : > { %1541 = vmatprep.subr.mxu1 %v5190_v60  ;;  %v1306_v2 = vsub.f32 %v5177_v56, %v5190_v60  ;;  %v1312_v3 = vsub.f32 %v5180_v57, %v5193_v61  ;;  %v2246_v22 = vsub.f32 %v5209_v4, %v5228_v16 }
  0x9b   : > { %1545 = vmatpush1.msra.mxu1 %v5193_v61  ;;  %v5262_v34 = vand.u32 4294901760, %v2252_v28  ;;  %v2235_v63 = vsub.f32 %v2233_v48, %v2234_v53 }
  0x9c   : > { %1617 = vmatprep.subr.mxu1 %v5169_v51  ;;  %v5215_v6 = vand.u32 4294901760, %v1306_v2  ;;  %v5217_v7 = vand.u32 4294901760, %v1312_v3  ;;  %v5251_v26 = vand.u32 4294901760, %v2246_v22  ;;  %v3174_v2 = vsub.f32 %v3172_v39, %v3173_v54 }
  0x9e   : > { %1308 = vmatprep.subr.mxu0 %v5215_v6 }
  0x9f   : > { %1314 = vmatpush1.msra.mxu0 %v5217_v7 }
  0xa0   : > { %1379 = vmatmul.mubr.f32.vlgmr.msra.gmra.mrb[2].mxu0 %v5134_v31  ;;  %1387 = vmatprep.subr.mxu0 %v5177_v56 }
  0xa1   : > { %1610 = vmatmul.mubr.f32.vlgmr.msra.gmra.mrb[0].mxu1 %v5134_v31  ;;  %1390 = vmatpush1.msra.mxu0 %v5180_v57 }
  0xa2   : > { %1619 = vmatpush1.msra.mxu1 %v5171_v52  ;;  %1453 = vmatprep.mubr.f32.mxu0 %v4971_v1 }
  0xa3   : > { %2637 = vmatprep.subr.mxu1 %v5187_v59  ;;  %1682 = vmatprep.mubr.f32.mxu1 %v4971_v1 }
  0xa4   : > { %1698 = vmatprep.subr.mxu0 %v5066_v9 }
  0xa8   : > { %1456 = vmatmul.mubr.f32.vlgmr.msra.gmra.mrb[2].mxu0 %v5140_v33  ;;  %v271_v33 = vpop.permute.xlu0 %270 }
  0xa9   : > { %1684 = vmatmul.mubr.f32.vlgmr.msra.gmra.mrb[0].mxu1 %v5134_v31  ;;  %1700 = vmatpush1.msra.mxu0 %v5064_v8  ;;  %v273_v31 = vpop.permute.xlu1 %272 }
  0xaa   : > { %2639 = vmatpush1.msra.mxu1 %v5212_v5  ;;  %1763 = vmatprep.mubr.f32.mxu0 %v4971_v1  ;;  %v276_v35 = vsel %vm274_vm6, %v273_v31, %v271_v33  ;;  %v275_v40 = vsel %vm274_vm6, %v271_v33, %v273_v31 }
  0xab   : > { %2719 = vmatprep.subr.mxu1 %v5251_v26  ;;  %2702 = vmatprep.mubr.f32.mxu1 %v4971_v1  ;;  %v278_v36 = vsel %vm269_vm7, %v276_v35, 0.0  ;;  %v277_v43 = vsel %vm5147_vm3, %v275_v40, 0.0 }
  0xac   : > { %1769 = vmatmul.mubr.f32.vlgmr.msra.gmra.mrb[4].mxu0 %v1768_v27  ;;  %1780 = vmatprep.subr.mxu0 %v5087_v18  ;;  %v5297_v37 = vand.u32 4294901760, %v278_v36  ;;  %v5319_v46 = vand.u32 4294901760, %v277_v43 }
  0xad   : > { %2708 = vmatmul.mubr.f32.vlgmr.msra.gmra.mrb[2].mxu1 %v2707_v29  ;;  %1786 = vmatpush1.msra.mxu0 %v5089_v19 }
  0xae   : > { %2725 = vmatpush1.msra.mxu1 %v5262_v34  ;;  %1849 = vmatprep.mubr.f32.mxu0 %v4971_v1  ;;  %v3183_v30 = vsub.f32 %v278_v36, %v5297_v37  ;;  %v3189_v49 = vsub.f32 %v277_v43, %v5319_v46 }
  0xaf   : > { %2798 = vmatprep.subr.mxu1 %v5209_v4  ;;  %2788 = vmatprep.mubr.f32.mxu1 %v4971_v1 }
  0xb0   : > { %1859 = vmatprep.subr.mxu0 %v5072_v12  ;;  %v3184_v47 = vand.u32 4294901760, %v3183_v30  ;;  %v3190_v55 = vand.u32 4294901760, %v3189_v49 }
  0xb2   : > { %v3185_v50 = vsub.f32 %v3183_v30, %v3184_v47  ;;  %v3191_v3 = vsub.f32 %v3189_v49, %v3190_v55 }
  0xb4   : > { %1851 = vmatmul.mubr.f32.vlgmr.msra.gmra.mrb[4].mxu0 %v5195_v62  ;;  %v3186_v58 = vand.u32 4294901760, %v3185_v50 }
  0xb5   : > { %2790 = vmatmul.mubr.f32.vlgmr.msra.gmra.mrb[2].mxu1 %v5201_v0  ;;  %1862 = vmatpush1.msra.mxu0 %v5069_v11 }
  0xb6   : > { %2801 = vmatpush1.msra.mxu1 %v5231_v17  ;;  %1925 = vmatprep.mubr.f32.mxu0 %v4971_v1 }
  0xb7   : > { %2874 = vmatprep.subr.mxu1 %v5187_v59  ;;  %2864 = vmatprep.mubr.f32.mxu1 %v4971_v1 }
  0xb8   : > { %1935 = vmatprep.subr.mxu0 %v5066_v9 }
  0xbc   : > { %1928 = vmatmul.mubr.f32.vlgmr.msra.gmra.mrb[4].mxu0 %v5220_v10  ;;  %v2236_v10 = vand.u32 4294901760, %v2235_v63 }
  0xbd   : > { %2867 = vmatmul.mubr.f32.vlgmr.msra.gmra.mrb[2].mxu1 %v5223_v13  ;;  %1937 = vmatpush1.msra.mxu0 %v5064_v8  ;;  %v3175_v13 = vand.u32 4294901760, %v3174_v2 }
  0xbe   : > { %2876 = vmatpush1.msra.mxu1 %v5212_v5  ;;  %2000 = vmatprep.mubr.f32.mxu0 %v4971_v1 }
  0xbf   : > { %2952 = vmatprep.subr.mxu1 %v5228_v16  ;;  %2939 = vmatprep.mubr.f32.mxu1 %v4971_v1 }
  0xc0   : > { %2013 = vmatprep.subr.mxu0 %v5077_v14 }
  0xc4   : > { %2004 = vmatmul.mubr.f32.vlgmr.msra.gmra.mrb[4].mxu0 %v1766_v20  ;;  %v3192_v20 = vand.u32 4294901760, %v3191_v3 }
  0xc5   : > { %2943 = vmatmul.mubr.f32.vlgmr.msra.gmra.mrb[2].mxu1 %v2705_v21  ;;  %2017 = vmatpush1.msra.mxu0 %v5080_v15 }
  0xc6   : > { %2956 = vmatpush1.msra.mxu1 %v5246_v23  ;;  %2080 = vmatprep.mubr.f32.mxu0 %v4971_v1 }
  0xc7   : > { %3028 = vmatprep.subr.mxu1 %v5187_v59  ;;  %2089 = vmatprep.subr.mxu0 %v5066_v9 }
  0xc8   : > { %3019 = vmatprep.mubr.f32.mxu1 %v4971_v1 }
  0xcc   : > { %2082 = vmatmul.mubr.f32.vlgmr.msra.gmra.mrb[4].mxu0 %v5195_v62 }
  0xcd   : > { %2091 = vmatpush1.msra.mxu0 %v5064_v8  ;;  %3021 = vmatmul.mubr.f32.vlgmr.msra.gmra.mrb[2].mxu1 %v5201_v0 }
  0xce   : > { %3030 = vmatpush1.msra.mxu1 %v5212_v5  ;;  %2166 = vmatprep.subr.mxu0 %v5187_v59 }
  0xcf   : > { %2154 = vmatprep.mubr.f32.mxu0 %v4971_v1  ;;  %3093 = vmatprep.mubr.f32.mxu1 %v4971_v1 }
  0xd0   : > { %3105 = vmatprep.subr.mxu1 %v5297_v37 }
  0xd4   : > { %2156 = vmatmul.mubr.f32.vlgmr.msra.gmra.mrb[4].mxu0 %v5195_v62  ;;  %v4713_v62 = vld [vmem:[%s5480_s1 + $0x30] sm:$0xff] }
  0xd5   : > { %2168 = vmatpush1.msra.mxu0 %v5212_v5  ;;  %3095 = vmatmul.mubr.f32.vlgmr.msra.gmra.mrb[2].mxu1 %v5201_v0  ;;  %v3572_v0 = vsel %vm281_vm0, %v4713_v62, 0 }
  0xd6   : > { %2248 = vmatprep.subr.mxu0 %v5251_v26  ;;  %3107 = vmatpush1.msra.mxu1 %v5319_v46 }
  0xd7   : > { %3187 = vmatprep.subr.mxu1 %v3186_v58  ;;  %2231 = vmatprep.mubr.f32.mxu0 %v4971_v1 }
  0xd8   : > { %3170 = vmatprep.mubr.f32.mxu1 %v4971_v1 }
  0xdc   : > { %2237 = vmatmul.mubr.f32.vlgmr.msra.gmra.mrb[4].mxu0 %v2236_v10 }
  0xdd   : > { %2254 = vmatpush1.msra.mxu0 %v5262_v34  ;;  %3176 = vmatmul.mubr.f32.vlgmr.msra.gmra.mrb[2].mxu1 %v3175_v13 }
  0xde   : > { %3193 = vmatpush1.msra.mxu1 %v3192_v20  ;;  %2327 = vmatprep.subr.mxu0 %v5209_v4  ;;  %v3641_v4 = vand.u32 4294901760, %v3572_v0 }
  0xdf   : > { %3266 = vmatprep.subr.mxu1 %v3183_v30  ;;  %2317 = vmatprep.mubr.f32.mxu0 %v4971_v1 }
  0xe0   : > { %3256 = vmatprep.mubr.f32.mxu1 %v4971_v1 }
  0xe4   : > { %2319 = vmatmul.mubr.f32.vlgmr.msra.gmra.mrb[4].mxu0 %v5315_v44 }
  0xe5   : > { %2330 = vmatpush1.msra.mxu0 %v5231_v17  ;;  %3258 = vmatmul.mubr.f32.vlgmr.msra.gmra.mrb[2].mxu1 %v5317_v45 }
  0xe6   : > { %3269 = vmatpush1.msra.mxu1 %v3189_v49  ;;  %2403 = vmatprep.subr.mxu0 %v5187_v59 }
  0xe7   : > { %3342 = vmatprep.subr.mxu1 %v5297_v37  ;;  %2393 = vmatprep.mubr.f32.mxu0 %v4971_v1 }
  0xe8   : > { %3332 = vmatprep.mubr.f32.mxu1 %v4971_v1 }
  0xec   : > { %2396 = vmatmul.mubr.f32.vlgmr.msra.gmra.mrb[4].mxu0 %v2233_v48 }
  0xed   : > { %2405 = vmatpush1.msra.mxu0 %v5212_v5  ;;  %3335 = vmatmul.mubr.f32.vlgmr.msra.gmra.mrb[2].mxu1 %v3172_v39 }
  0xee   : > { %3344 = vmatpush1.msra.mxu1 %v5319_v46  ;;  %2481 = vmatprep.subr.mxu0 %v5228_v16  ;;  %v3642_v16 = vsub.f32 %v3572_v0, %v3641_v4 }
  0xef   : > { %3420 = vmatprep.subr.mxu1 %v3184_v47  ;;  %2468 = vmatprep.mubr.f32.mxu0 %v4971_v1 }
  0xf0   : > { %3407 = vmatprep.mubr.f32.mxu1 %v4971_v1 }
  0xf4   : > { %2472 = vmatmul.mubr.f32.vlgmr.msra.gmra.mrb[4].mxu0 %v2234_v53 }
  0xf5   : > { %2485 = vmatpush1.msra.mxu0 %v5246_v23  ;;  %3411 = vmatmul.mubr.f32.vlgmr.msra.gmra.mrb[2].mxu1 %v3173_v54 }
  0xf6   : > { %3424 = vmatpush1.msra.mxu1 %v3190_v55  ;;  %2557 = vmatprep.subr.mxu0 %v5187_v59  ;;  %v3643_v59 = vand.u32 4294901760, %v3642_v16 }
  0xf7   : > { %3496 = vmatprep.subr.mxu1 %v5297_v37  ;;  %2548 = vmatprep.mubr.f32.mxu0 %v4971_v1 }
  0xf8   : > { %3487 = vmatprep.mubr.f32.mxu1 %v4971_v1  ;;  %v3644_v17 = vsub.f32 %v3642_v16, %v3643_v59 }
  0xfc   : > { %2550 = vmatmul.mubr.f32.vlgmr.msra.gmra.mrb[4].mxu0 %v5315_v44 }
  0xfd   : > { %2559 = vmatpush1.msra.mxu0 %v5212_v5  ;;  %3489 = vmatmul.mubr.f32.vlgmr.msra.gmra.mrb[2].mxu1 %v5317_v45  ;;  %v3645_v5 = vand.u32 4294901760, %v3644_v17 }
  0xfe   : > { %3498 = vmatpush1.msra.mxu1 %v5319_v46  ;;  %2622 = vmatprep.mubr.f32.mxu0 %v4971_v1 }
  0xff   : > { %3575 = vmatprep.subr.mxu1 %v5169_v51  ;;  %3561 = vmatprep.mubr.f32.mxu1 %v4971_v1 }
 0x104   : > { %2624 = vmatmul.mubr.f32.vlgmr.msra.gmra.mrb[4].mxu0 %v5315_v44 }
 0x105   : > { %3563 = vmatmul.mubr.f32.vlgmr.msra.gmra.mrb[2].mxu1 %v5317_v45 }
 0x106   : > { %3577 = vmatpush1.msra.mxu1 %v5171_v52  ;;  %3640 = vmatprep.mubr.f32.mxu1 %v4971_v1 }
 0x107   : > { %3657 = vmatprep.subr.mxu1 %v5215_v6 }
 0x10d   : > { %3646 = vmatmul.mubr.f32.vlgmr.msra.gmra.mrb[2].mxu1 %v3645_v5 }
 0x10e   : > { %3663 = vmatpush1.msra.mxu1 %v5217_v7  ;;  %3726 = vmatprep.mubr.f32.mxu1 %v4971_v1 }
 0x10f   : > { %3736 = vmatprep.subr.mxu1 %v5177_v56  ;;  %v4714_v56 = vld [vmem:[%s5480_s1 + $0x40] sm:$0xff] }
 0x115   : > { %3728 = vmatmul.mubr.f32.vlgmr.msra.gmra.mrb[2].mxu1 %v3641_v4 }
 0x116   : > { %3739 = vmatpush1.msra.mxu1 %v5180_v57  ;;  %3802 = vmatprep.mubr.f32.mxu1 %v4971_v1  ;;  %v4044_v57 = vsel %vm281_vm0, %v4714_v56, 0 }
 0x117   : > { %3812 = vmatprep.subr.mxu1 %v5169_v51  ;;  %v4113_v6 = vand.u32 4294901760, %v4044_v57 }
 0x119   : > { %v4114_v7 = vsub.f32 %v4044_v57, %v4113_v6 }
 0x11b   : > { %v5382_v21 = vpop.f32.mrb[0].mxu0 }
 0x11c   : > { %v5384_v22 = vpop.f32.mrb[1].mxu0 }
 0x11d   : > { %3805 = vmatmul.mubr.f32.vlgmr.msra.gmra.mrb[2].mxu1 %v3642_v16 }
 0x11e   : > { %3814 = vmatpush1.msra.mxu1 %v5171_v52  ;;  %3877 = vmatprep.mubr.f32.mxu1 %v4971_v1 }
 0x11f   : > { %3890 = vmatprep.subr.mxu1 %v5190_v60  ;;  %v4115_v60 = vand.u32 4294901760, %v4114_v7 }
 0x121   : > { %v4116_v23 = vsub.f32 %v4114_v7, %v4115_v60 }
 0x125   : > { %3881 = vmatmul.mubr.f32.vlgmr.msra.gmra.mrb[2].mxu1 %v3643_v59 }
 0x126   : > { %3894 = vmatpush1.msra.mxu1 %v5193_v61  ;;  %3957 = vmatprep.mubr.f32.mxu1 %v4971_v1  ;;  %v4117_v61 = vand.u32 4294901760, %v4116_v23 }
 0x127   : > { %3966 = vmatprep.subr.mxu1 %v5169_v51 }
 0x12d   : > { %3959 = vmatmul.mubr.f32.vlgmr.msra.gmra.mrb[2].mxu1 %v3641_v4 }
 0x12e   : > { %3968 = vmatpush1.msra.mxu1 %v5171_v52  ;;  %4031 = vmatprep.mubr.f32.mxu1 %v4971_v1 }
 0x12f   : > { %4047 = vmatprep.subr.mxu1 %v5066_v9 }
 0x135   : > { %4033 = vmatmul.mubr.f32.vlgmr.msra.gmra.mrb[2].mxu1 %v3641_v4 }
 0x136   : > { %4049 = vmatpush1.msra.mxu1 %v5064_v8  ;;  %4112 = vmatprep.mubr.f32.mxu1 %v4971_v1 }
 0x137   : > { %4129 = vmatprep.subr.mxu1 %v5087_v18 }
 0x13d   : > { %4118 = vmatmul.mubr.f32.vlgmr.msra.gmra.mrb[2].mxu1 %v4117_v61 }
 0x13e   : > { %4135 = vmatpush1.msra.mxu1 %v5089_v19  ;;  %4198 = vmatprep.mubr.f32.mxu1 %v4971_v1 }
 0x13f   : > { %4208 = vmatprep.subr.mxu1 %v5072_v12 }
 0x145   : > { %4200 = vmatmul.mubr.f32.vlgmr.msra.gmra.mrb[2].mxu1 %v4113_v6 }
 0x146   : > { %4211 = vmatpush1.msra.mxu1 %v5069_v11  ;;  %4274 = vmatprep.mubr.f32.mxu1 %v4971_v1 }
 0x147   : > { %4284 = vmatprep.subr.mxu1 %v5066_v9 }
 0x14d   : > { %4277 = vmatmul.mubr.f32.vlgmr.msra.gmra.mrb[2].mxu1 %v4114_v7 }
 0x14e   : > { %4286 = vmatpush1.msra.mxu1 %v5064_v8  ;;  %4349 = vmatprep.mubr.f32.mxu1 %v4971_v1 }
 0x14f   : > { %4362 = vmatprep.subr.mxu1 %v5077_v14 }
 0x155   : > { %4353 = vmatmul.mubr.f32.vlgmr.msra.gmra.mrb[2].mxu1 %v4115_v60 }
 0x156   : > { %4366 = vmatpush1.msra.mxu1 %v5080_v15  ;;  %4429 = vmatprep.mubr.f32.mxu1 %v4971_v1 }
 0x157   : > { %4438 = vmatprep.subr.mxu1 %v5066_v9 }
 0x15d   : > { %4431 = vmatmul.mubr.f32.vlgmr.msra.gmra.mrb[2].mxu1 %v4113_v6 }
 0x15e   : > { %4440 = vmatpush1.msra.mxu1 %v5064_v8  ;;  %4503 = vmatprep.mubr.f32.mxu1 %v4971_v1 }
 0x165   : > { %4505 = vmatmul.mubr.f32.vlgmr.msra.gmra.mrb[2].mxu1 %v4113_v6 }
 0x17b   : > { %v1457_v11 = vpop.f32.mrb[2].mxu0 }
 0x17c   : > { %v1685_v12 = vpop.f32.mrb[0].mxu1  ;;  %v1459_v18 = vpop.f32.mrb[3].mxu0 }
 0x17d   : > { %v4728_v19 = vadd.f32 %v1685_v12, %v1457_v11  ;;  %v1687_v51 = vpop.f32.mrb[1].mxu1 }
 0x17e   : > { %v4729_v52 = vadd.f32 %v1687_v51, %v1459_v18 }
 0x17f   : > { %v4513_v14 = vadd.f32 %v4728_v19, %v5382_v21 }
 0x180   : > { %v4514_v15 = vadd.f32 %v4729_v52, %v5384_v22 }
 0x1d7   : > { %v2625_v24 = vpop.f32.mrb[4].mxu0 }
 0x1d8   : > { %v4515_v25 = vadd.f32 %v4513_v14, %v2625_v24  ;;  %v2627_v26 = vpop.f32.mrb[5].mxu0 }
 0x1d9   : > { %v4516_v9 = vadd.f32 %v4514_v15, %v2627_v26 }
 0x238   : > { %v4506_v27 = vpop.f32.mrb[2].mxu1 }
 0x239   : > { %v4517_v28 = vadd.f32 %v4515_v25, %v4506_v27  ;;  %v4508_v8 = vpop.f32.mrb[3].mxu1 }
 0x23a   : > { %v4518_v29 = vadd.f32 %v4516_v9, %v4508_v8 }
 0x23c   : > { %v4519_v1 = vadd.f32 %v4518_v29, %v4517_v28 }
 0x23e   : > { %4520 = vadd.xlane.f32.xlu0 %v4519_v1 }
 0x2cb   : > { %v4521_v34 = vpop.xlane.xlu0 %4520 }
 0x2cc   : > { %v4522_v31 = vmul.f32 0.0009765625, %v4521_v34 }
 0x2ce   : > { %v4523_v33 = vsub.f32 %v5382_v21, %v4522_v31  ;;  %v4524_v35 = vsub.f32 %v5384_v22, %v4522_v31  ;;  %v4525_v36 = vsub.f32 %v4728_v19, %v4522_v31  ;;  %v4526_v32 = vsub.f32 %v4729_v52, %v4522_v31 }
 0x2cf   : > { %v4527_v37 = vsub.f32 %v2625_v24, %v4522_v31  ;;  %v4528_v38 = vsub.f32 %v2627_v26, %v4522_v31  ;;  %v4529_v40 = vsub.f32 %v4506_v27, %v4522_v31  ;;  %v4530_v41 = vsub.f32 %v4508_v8, %v4522_v31 }
 0x2d0   : > { %v4531_v42 = vmul.f32 %v4523_v33, %v4523_v33  ;;  %v4532_v43 = vmul.f32 %v4524_v35, %v4524_v35  ;;  %v4533_v30 = vmul.f32 %v4525_v36, %v4525_v36  ;;  %v4534_v44 = vmul.f32 %v4526_v32, %v4526_v32 }
 0x2d1   : > { %v4537_v47 = vmul.f32 %v4527_v37, %v4527_v37  ;;  %v4538_v48 = vmul.f32 %v4528_v38, %v4528_v38  ;;  %v4541_v50 = vmul.f32 %v4529_v40, %v4529_v40  ;;  %v4542_v53 = vmul.f32 %v4530_v41, %v4530_v41 }
 0x2d2   : > { %v4535_v45 = vadd.f32 %v4533_v30, %v4531_v42  ;;  %v4536_v46 = vadd.f32 %v4534_v44, %v4532_v43 }
 0x2d4   : > { %v4539_v39 = vadd.f32 %v4537_v47, %v4535_v45  ;;  %v4540_v49 = vadd.f32 %v4538_v48, %v4536_v46 }
 0x2d6   : > { %v4543_v54 = vadd.f32 %v4541_v50, %v4539_v39  ;;  %v4544_v55 = vadd.f32 %v4542_v53, %v4540_v49 }
 0x2d8   : > { %v4545_v58 = vadd.f32 %v4544_v55, %v4543_v54 }
 0x2da   : > { %4546 = vadd.xlane.f32.xlu1 %v4545_v58 }
 0x367   : > { %v4547_v63 = vpop.xlane.xlu1 %4546 }
 0x368   : > { %v4548_v2 = vmul.f32 0.0009765625, %v4547_v63 }
 0x36a   : > { %v4549_v3 = vadd.f32 1e-05, %v4548_v2 }
 0x36c   : > { %4889 = vrsqrt.f32 %v4549_v3 }
 0x376   : > { %v4890_v10 = vpop.eup %4889 }
 0x377   : > { %v4551_v13 = vmul.f32 %v4890_v10, %v4523_v33  ;;  %v4552_v20 = vmul.f32 %v4890_v10, %v4524_v35  ;;  %v4557_v62 = vmul.f32 %v4890_v10, %v4525_v36  ;;  %v4558_v0 = vmul.f32 %v4890_v10, %v4526_v32 }
 0x378   : > { %v4564_v4 = vmul.f32 %v4890_v10, %v4527_v37  ;;  %v4565_v16 = vmul.f32 %v4890_v10, %v4528_v38  ;;  %v4571_v59 = vmul.f32 %v4890_v10, %v4529_v40  ;;  %v4572_v17 = vmul.f32 %v4890_v10, %v4530_v41 }
 0x379   : > { %v4553_v5 = vmax.f32 %v4551_v13, 0.0  ;;  %v4554_v21 = vmax.f32 %v4552_v20, 0.0  ;;  %v4559_v22 = vmax.f32 %v4557_v62, 0.0  ;;  %v4560_v56 = vmax.f32 %v4558_v0, 0.0 }
 0x37a   : > { %v4566_v57 = vmax.f32 %v4564_v4, 0.0  ;;  %v4567_v6 = vmax.f32 %v4565_v16, 0.0  ;;  %v4573_v7 = vmax.f32 %v4571_v59, 0.0  ;;  %v4574_v60 = vmax.f32 %v4572_v17, 0.0 }
 0x37b   : > { %4555 = vst [vmem:[%s203_s9] sm:$0xff] %v4553_v5  ;;  %4556 = vst [vmem:[%s203_s9 + $0x8] sm:$0xff] %v4554_v21 }
 0x37c   : > { %4715 = vst [vmem:[%s203_s9 + $0x10] sm:$0xff] %v4559_v22  ;;  %4716 = vst [vmem:[%s203_s9 + $0x18] sm:$0xff] %v4560_v56 }
 0x37d   : > { %4717 = vst [vmem:[%s203_s9 + $0x20] sm:$0xff] %v4566_v57  ;;  %4718 = vst [vmem:[%s203_s9 + $0x28] sm:$0xff] %v4567_v6 }
 0x37e   : > { %4719 = vst [vmem:[%s203_s9 + $0x30] sm:$0xff] %v4573_v7  ;;  %4720 = vst [vmem:[%s203_s9 + $0x38] sm:$0xff] %v4574_v60 }
 0x37f   : > { %4904 = shalt.err (!%p4901_p5)
}
 0x380   : > { %s4905_s27 = scalar_lea.hbm %s5427_s18, 1024  ;;  %s4909_s30 = scalar_lea.hbm %s5482_s3, 2048 }
 0x381   : > { %p4906_p6 = scmp.ne.s32.totalorder %s5427_s18, %s4905_s27  ;;  %p4910_p10 = scmp.lt.u32.totalorder %s5427_s18, %s5482_s3 }
 0x382   : > { %p4911_p11 = scmp.lt.u32.totalorder %s4909_s30, %s4905_s27  ;;  %p4913_p13 = scmp.lt.u32.totalorder %s4905_s27, %s5427_s18 }
 0x383   : > { %p4907_p7 = pnand %p4906_p6, %p5038_p4 }
 0x384   : > { %p4912_p12 = por %p4911_p11, %p4910_p10 }
 0x385   : > { %p4908_p9 = pneg %p4907_p7 }
 0x386   : > { %p4914_p0 = por %p4913_p13, %p4912_p12 }
 0x388   : > { %p4915_p1 = pnand %p4914_p0, %p4908_p9 }
 0x38a   : > { %4918 = shalt.err (!%p4915_p1)
}
 0x38b   : > { %s4976_s6 = smov 256   ;;  %s4977_s7 = smov 16  }
 0x38c   : > { %4828 = dma.vmem_to_hbm [thread:$0]  (%p5038_p4), %s5429_s10, 1024, %s5427_s18, %s5433_s15, %s4976_s6, %s4976_s6, %s4977_s7  }
 0x38d PF: > { %p4834_p2 = scmp.ge.s32.totalorder %s4969_s17, 2  ;;  %s4609_s8 = sand.u32 1, %s4949_s12  }
 0x38e   : > { %s4610_s9 = scalar_lea.sflag [#allocation3], %s4609_s8 }
 0x38f   : > { %p4831_p3 = pnand %p4834_p2, %p5045_p8 }
 0x391   : > { %4944 = dma.done.wait (!%p4831_p3), %s4610_s9, 1024  }
 0x392   : > { %4946 = vsyncadd (!%p4831_p3), %s4610_s9, 4294966272  ;;  %s16_s17 = sadd.s32 1, %s4969_s17   ;;  %s5489_s12 = smov %s4953_s13 }
 0x393   : > { %p13_p5 = scmp.ge.s32.totalorder %s16_s17, 4   ;;  %s5490_s13 = smov %s4957_s14 }
 0x394   : > { %s5491_s14 = smov %s5051_s24  ;;  %s5492_s15 = smov %s4965_s16 }
 0x395   : > { %s5493_s16 = smov %s5495_s19  ;;  %15 = sbr.rel (!%p13_p5) target bundleno = 4 (0x4), region = 84 }
 0x39c   :  { %4615 = vsyncpa [#allocation3], 1 }
 0x39d   :  { %4617 = vsyncpa [#allocation3 + $0x1], 1 }

</bundles_post_ra>
